<compile_context>
chip_gen: v7x
topology: tpu7x:2x2x1
jax: 0.10.0
libtpu: 0.0.40
codegen_flags: <defaults>
</compile_context>

<pallas_src>
import jax
import jax.numpy as jnp
from jax.experimental import pallas as pl
from jax.experimental.pallas import tpu as pltpu

N_ACTIONS = 4
BINS = 20                 # len(DistributionCalculator.bin_mids) for 21 edges in [-10, 10]
OUT = N_ACTIONS * BINS    # 80 real output lanes (flat PyTorch index j = action*BINS + bin)
OUT_PAD = 128             # lane-dense padded head width (unmasked vst, (8,128)-aligned)
IN_DIM = 64
H1 = 164
H2 = 150
MAX_BATCH_TILE = 512      # rows per grid step (review: 256-1024; multiple of 8)
NEG_PAD = -1.0e30         # pad-lane bias -> exp(logit - rowmax) underflows to exactly 0


def qdist_kernel(x_ref, w1_ref, b1_ref, w2_ref, b2_ref, w3_ref, b3_ref, seg_ref, o_ref):
    # x: (TB, 64)     w1: (64, 164)   b1: (1, 164)
    # w2: (164, 150)  b2: (1, 150)
    # w3: (150, 128)  b3: (1, 128)    seg: (128, 128)   o: (TB, 128)
    x = x_ref[...]

    h1 = jnp.dot(x, w1_ref[...], preferred_element_type=jnp.float32) + b1_ref[...]
    h1 = jnp.maximum(h1, 0.0).astype(w2_ref.dtype)

    h2 = jnp.dot(h1, w2_ref[...], preferred_element_type=jnp.float32) + b2_ref[...]
    h2 = jnp.maximum(h2, 0.0).astype(w3_ref.dtype)

    # Fused per-action heads, lane-dense 128-wide logits (pad lanes = -1e30).
    logits = jnp.dot(h2, w3_ref[...], preferred_element_type=jnp.float32) + b3_ref[...]

    # Softmax prologue: one global per-row max (shift-invariant within each group).
    m = jnp.max(logits, axis=-1, keepdims=True)
    e = jnp.exp(logits - m)                      # pad lanes -> exactly 0

    # Per-action denominators via MXU block-diagonal segment-sum (MXU is idle here).
    denom = jnp.dot(e, seg_ref[...], preferred_element_type=jnp.float32)

    o_ref[...] = e * pl.reciprocal(denom, approx=True)


def make_params(key, dtype=jnp.float32):
    """Deterministic init mimicking PyTorch Linear defaults (U[-1/sqrt(fan_in), +]).

    Weights are stored input-major (in_features, out_features).  NOTE: if real PyTorch
    weights are loaded, nn.Linear stores W as (out, in) and must be transposed first.
    l3's columns follow PyTorch's flat output index j = action*BINS + bin, so view(4,-1)
    and the wrapper's (B, 80)->(B, 4, 20) reshape agree.  Weights are cast to `dtype`
    (bf16 recommended on v5e/v6e/v7x — the MXU is bf16-native on all three); biases
    stay f32 (added to the f32 MXU accumulator)."""
    ks = jax.random.split(key, 6)

    def lin(kw, kb, fan_in, fan_out):
        bound = 1.0 / jnp.sqrt(jnp.float32(fan_in))
        w = jax.random.uniform(kw, (fan_in, fan_out), jnp.float32, -bound, bound)
        b = jax.random.uniform(kb, (1, fan_out), jnp.float32, -bound, bound)
        return w.astype(dtype), b

    w1, b1 = lin(ks[0], ks[1], IN_DIM, H1)
    w2, b2 = lin(ks[2], ks[3], H1, H2)
    w3, b3 = lin(ks[4], ks[5], H2, OUT)
    return (w1, b1, w2, b2, w3, b3)


def _round_up(n, m):
    return ((n + m - 1) // m) * m


def qdist_forward(x, params, *, max_batch_tile=MAX_BATCH_TILE):
    """Forward pass.  Accepts a single state (anything flattening to 64 features) or a
    batch whose leading dims flatten to B states of 64 features.  Returns (4, BINS) for
    a single state, (B, 4, BINS) for a batch."""
    w1, b1, w2, b2, w3, b3 = params

    xf = jnp.asarray(x)
    single = xf.size == IN_DIM
    xf = xf.reshape(-1, IN_DIM).astype(w1.dtype)   # MXU operand dtype follows the weights
    b = xf.shape[0]

    # Fat batch tiles amortize the ~0.35 us/step overhead and fill the MXU M dimension;
    # small batches become a single full tile.  Multi-tile batches keep a >=2-step
    # "parallel" grid so v7x can shard across its 2 TensorCores.
    tile = min(max_batch_tile, _round_up(b, 8))
    bp = _round_up(b, tile)
    if bp != b:
        xf = jnp.pad(xf, ((0, bp - b), (0, 0)))

    # Lane-dense 128-wide head: zero-pad w3 columns; pad-lane biases hugely negative.
    w3p = jnp.pad(w3, ((0, 0), (0, OUT_PAD - OUT)))
    b3p = jnp.pad(jnp.asarray(b3, jnp.float32), ((0, 0), (0, OUT_PAD - OUT)),
                  constant_values=NEG_PAD)

    # Block-diagonal ones matrix for the softmax segment-sum; pad lanes share group 3
    # (their e is exactly 0, so group 3's denominator is unaffected and never 0).
    grp = jnp.minimum(jnp.arange(OUT_PAD), OUT - 1) // BINS
    seg = (grp[:, None] == grp[None, :]).astype(jnp.float32)

    def row_spec(shape):       # marches with the batch grid
        return pl.BlockSpec(shape, lambda i: (i, 0))

    def const_spec(shape):     # constant block index -> stays VMEM-resident, no re-DMA
        return pl.BlockSpec(shape, lambda i: (0, 0))

    itemsize = jnp.dtype(w1.dtype).itemsize
    flops = 2 * bp * (IN_DIM * H1 + H1 * H2 + H2 * OUT_PAD + OUT_PAD * OUT_PAD)
    bytes_accessed = (
        bp * IN_DIM * itemsize
        + (IN_DIM * H1 + H1 * H2 + H2 * OUT_PAD) * itemsize
        + (H1 + H2 + OUT_PAD) * 4
        + OUT_PAD * OUT_PAD * 4
        + bp * OUT_PAD * 4
    )

    probs = pl.pallas_call(
        qdist_kernel,
        out_shape=jax.ShapeDtypeStruct((bp, OUT_PAD), jnp.float32),
        grid=(bp // tile,),
        in_specs=[
            row_spec((tile, IN_DIM)),
            const_spec((IN_DIM, H1)),
            const_spec((1, H1)),
            const_spec((H1, H2)),
            const_spec((1, H2)),
            const_spec((H2, OUT_PAD)),
            const_spec((1, OUT_PAD)),
            const_spec((OUT_PAD, OUT_PAD)),
        ],
        out_specs=row_spec((tile, OUT_PAD)),
        compiler_params=pltpu.CompilerParams(
            dimension_semantics=("parallel",),   # batch tiles independent (v7x megacore)
        ),
        cost_estimate=pl.CostEstimate(
            flops=int(flops),
            transcendentals=int(bp * OUT_PAD),
            bytes_accessed=int(bytes_accessed),
        ),
    )(xf, w1, jnp.asarray(b1, jnp.float32), w2, jnp.asarray(b2, jnp.float32),
      w3p, b3p, seg)

    probs = probs[:b, :OUT].reshape(b, N_ACTIONS, BINS)
    return probs[0] if single else probs


def reference_forward(x, params):
    """Pure-JAX f32 reference matching the PyTorch module's forward."""
    w1, b1, w2, b2, w3, b3 = [jnp.asarray(p, jnp.float32) for p in params]
    xf = jnp.asarray(x, jnp.float32).reshape(-1, IN_DIM)
    h1 = jax.nn.relu(xf @ w1 + b1)
    h2 = jax.nn.relu(h1 @ w2 + b2)
    logits = (h2 @ w3 + b3).reshape(-1, N_ACTIONS, BINS)
    return jax.nn.softmax(logits, axis=-1)


if __name__ == "__main__":
    key = jax.random.PRNGKey(0)
    k_param, k_x = jax.random.split(key)

    params = make_params(k_param)                              # f32 weights
    # Batch of 32 gridworld-like states, each 8x8 -> flattens to 64 features.
    B = 32
    x = jax.random.normal(k_x, (B, 8, 8), jnp.float32)

    out = jax.block_until_ready(qdist_forward(x, params))
    assert out.shape == (B, N_ACTIONS, BINS)
    ref = reference_forward(x, params)
    assert bool(jnp.allclose(out, ref, atol=5e-3, rtol=5e-3))
    row_sums = jnp.sum(out, axis=-1)
    assert bool(jnp.all(jnp.abs(row_sums - 1.0) < 1e-2))

    # Exercise a multi-step grid (forces >1 batch tile) to cover the pipelined path.
    out_multi = jax.block_until_ready(qdist_forward(x, params, max_batch_tile=16))
    assert bool(jnp.allclose(out_multi, ref, atol=5e-3, rtol=5e-3))

    # Single-state call, matching the PyTorch module's forward signature exactly.
    out1 = jax.block_until_ready(qdist_forward(x[0], params))
    assert out1.shape == (N_ACTIONS, BINS)
    assert bool(jnp.allclose(out1, ref[0], atol=5e-3, rtol=5e-3))

    # bf16 MXU operands (recommended on v5e/v6e/v7x); accumulation + softmax remain f32.
    params_bf16 = make_params(k_param, dtype=jnp.bfloat16)
    out_bf = jax.block_until_ready(qdist_forward(x, params_bf16))
    assert out_bf.shape == (B, N_ACTIONS, BINS)
    assert bool(jnp.all(jnp.abs(jnp.sum(out_bf, axis=-1) - 1.0) < 1e-2))

    print("KERNEL_OK")
</pallas_src>

<mosaic_0001>
module attributes {stable_mosaic.version = 11 : i64} {
  func.func @qdist_kernel(%arg0: i32, %arg1: memref<32x64xf32, #tpu.memory_space<vmem>>, %arg2: memref<64x164xf32, #tpu.memory_space<vmem>>, %arg3: memref<1x164xf32, #tpu.memory_space<vmem>>, %arg4: memref<164x150xf32, #tpu.memory_space<vmem>>, %arg5: memref<1x150xf32, #tpu.memory_space<vmem>>, %arg6: memref<150x128xf32, #tpu.memory_space<vmem>>, %arg7: memref<1x128xf32, #tpu.memory_space<vmem>>, %arg8: memref<128x128xf32, #tpu.memory_space<vmem>>, %arg9: memref<32x128xf32, #tpu.memory_space<vmem>>) attributes {dimension_semantics = [#tpu.dimension_semantics<parallel>], iteration_bounds = array<i64: 1>, scalar_prefetch = 0 : i64, scratch_operands = 0 : i64, tpu.core_type = #tpu.core_type<tc>, window_params = [{transform_indices = @transform_0, window_bounds = array<i64: 32, 64>}, {pipeline_mode = #tpu.pipeline_mode<synchronous>, transform_indices = @transform_1, window_bounds = array<i64: 64, 164>}, {pipeline_mode = #tpu.pipeline_mode<synchronous>, transform_indices = @transform_2, window_bounds = array<i64: 1, 164>}, {pipeline_mode = #tpu.pipeline_mode<synchronous>, transform_indices = @transform_3, window_bounds = array<i64: 164, 150>}, {pipeline_mode = #tpu.pipeline_mode<synchronous>, transform_indices = @transform_4, window_bounds = array<i64: 1, 150>}, {pipeline_mode = #tpu.pipeline_mode<synchronous>, transform_indices = @transform_5, window_bounds = array<i64: 150, 128>}, {pipeline_mode = #tpu.pipeline_mode<synchronous>, transform_indices = @transform_6, window_bounds = array<i64: 1, 128>}, {pipeline_mode = #tpu.pipeline_mode<synchronous>, transform_indices = @transform_7, window_bounds = array<i64: 128, 128>}, {transform_indices = @transform_8, window_bounds = array<i64: 32, 128>}]} {
    %c0 = arith.constant 0 : index
    %c0_0 = arith.constant 0 : index
    %0 = vector.load %arg1[%c0, %c0_0] : memref<32x64xf32, #tpu.memory_space<vmem>>, vector<32x64xf32>
    %c0_1 = arith.constant 0 : index
    %c0_2 = arith.constant 0 : index
    %1 = vector.load %arg2[%c0_1, %c0_2] : memref<64x164xf32, #tpu.memory_space<vmem>>, vector<64x164xf32>
    %cst = arith.constant dense<0.000000e+00> : vector<32x164xf32>
    %2 = tpu.matmul %0, %1, %cst {dimension_numbers = #tpu.dot_dimension_numbers<[1], [0], [0], [1], [0, 0, 1, 1], [], []>} : vector<32x64xf32>, vector<64x164xf32>, vector<32x164xf32> -> vector<32x164xf32>
    %c0_3 = arith.constant 0 : index
    %c0_4 = arith.constant 0 : index
    %3 = vector.load %arg3[%c0_3, %c0_4] : memref<1x164xf32, #tpu.memory_space<vmem>>, vector<1x164xf32>
    %4 = vector.broadcast %3 : vector<1x164xf32> to vector<32x164xf32>
    %5 = arith.addf %2, %4 : vector<32x164xf32>
    %cst_5 = arith.constant 0.000000e+00 : f32
    %6 = vector.broadcast %cst_5 : f32 to vector<32x164xf32>
    %7 = arith.maximumf %5, %6 : vector<32x164xf32>
    %c0_6 = arith.constant 0 : index
    %c0_7 = arith.constant 0 : index
    %8 = vector.load %arg4[%c0_6, %c0_7] : memref<164x150xf32, #tpu.memory_space<vmem>>, vector<164x150xf32>
    %cst_8 = arith.constant dense<0.000000e+00> : vector<32x150xf32>
    %9 = tpu.matmul %7, %8, %cst_8 {dimension_numbers = #tpu.dot_dimension_numbers<[1], [0], [0], [1], [0, 0, 1, 1], [], []>} : vector<32x164xf32>, vector<164x150xf32>, vector<32x150xf32> -> vector<32x150xf32>
    %c0_9 = arith.constant 0 : index
    %c0_10 = arith.constant 0 : index
    %10 = vector.load %arg5[%c0_9, %c0_10] : memref<1x150xf32, #tpu.memory_space<vmem>>, vector<1x150xf32>
    %11 = vector.broadcast %10 : vector<1x150xf32> to vector<32x150xf32>
    %12 = arith.addf %9, %11 : vector<32x150xf32>
    %cst_11 = arith.constant 0.000000e+00 : f32
    %13 = vector.broadcast %cst_11 : f32 to vector<32x150xf32>
    %14 = arith.maximumf %12, %13 : vector<32x150xf32>
    %c0_12 = arith.constant 0 : index
    %c0_13 = arith.constant 0 : index
    %15 = vector.load %arg6[%c0_12, %c0_13] : memref<150x128xf32, #tpu.memory_space<vmem>>, vector<150x128xf32>
    %cst_14 = arith.constant dense<0.000000e+00> : vector<32x128xf32>
    %16 = tpu.matmul %14, %15, %cst_14 {dimension_numbers = #tpu.dot_dimension_numbers<[1], [0], [0], [1], [0, 0, 1, 1], [], []>} : vector<32x150xf32>, vector<150x128xf32>, vector<32x128xf32> -> vector<32x128xf32>
    %c0_15 = arith.constant 0 : index
    %c0_16 = arith.constant 0 : index
    %17 = vector.load %arg7[%c0_15, %c0_16] : memref<1x128xf32, #tpu.memory_space<vmem>>, vector<1x128xf32>
    %18 = vector.broadcast %17 : vector<1x128xf32> to vector<32x128xf32>
    %19 = arith.addf %16, %18 : vector<32x128xf32>
    %cst_17 = arith.constant dense<0xFF800000> : vector<32xf32>
    %20 = vector.multi_reduction <maximumf>, %19, %cst_17 [1] : vector<32x128xf32> to vector<32xf32>
    %21 = vector.shape_cast %20 : vector<32xf32> to vector<32x1xf32>
    %22 = vector.broadcast %21 : vector<32x1xf32> to vector<32x128xf32>
    %23 = arith.subf %19, %22 : vector<32x128xf32>
    %24 = math.exp %23 : vector<32x128xf32>
    %c0_18 = arith.constant 0 : index
    %c0_19 = arith.constant 0 : index
    %25 = vector.load %arg8[%c0_18, %c0_19] : memref<128x128xf32, #tpu.memory_space<vmem>>, vector<128x128xf32>
    %cst_20 = arith.constant dense<0.000000e+00> : vector<32x128xf32>
    %26 = tpu.matmul %24, %25, %cst_20 {dimension_numbers = #tpu.dot_dimension_numbers<[1], [0], [0], [1], [0, 0, 1, 1], [], []>} : vector<32x128xf32>, vector<128x128xf32>, vector<32x128xf32> -> vector<32x128xf32>
    %27 = tpu.reciprocal %26 {approx = true} : vector<32x128xf32> -> vector<32x128xf32>
    %28 = arith.mulf %24, %27 : vector<32x128xf32>
    %c0_21 = arith.constant 0 : index
    %c0_22 = arith.constant 0 : index
    %29 = vector.load %arg9[%c0_21, %c0_22] : memref<32x128xf32, #tpu.memory_space<vmem>>, vector<32x128xf32>
    tpu.vector_store %arg9[%c0_21, %c0_22], %28 {strides = array<i32>} : memref<32x128xf32, #tpu.memory_space<vmem>>, vector<32x128xf32>,
    return
  }
  func.func @transform_0(%arg0: i32) -> (i32, i32) {
    %c0_i32 = arith.constant 0 : i32
    %c0_i32_0 = arith.constant 0 : i32
    return %arg0, %c0_i32 : i32, i32
  }
  func.func @transform_1(%arg0: i32) -> (i32, i32) {
    %c0_i32 = arith.constant 0 : i32
    %c0_i32_0 = arith.constant 0 : i32
    %c0_i32_1 = arith.constant 0 : i32
    return %c0_i32, %c0_i32_0 : i32, i32
  }
  func.func @transform_2(%arg0: i32) -> (i32, i32) {
    %c0_i32 = arith.constant 0 : i32
    %c0_i32_0 = arith.constant 0 : i32
    %c0_i32_1 = arith.constant 0 : i32
    return %c0_i32, %c0_i32_0 : i32, i32
  }
  func.func @transform_3(%arg0: i32) -> (i32, i32) {
    %c0_i32 = arith.constant 0 : i32
    %c0_i32_0 = arith.constant 0 : i32
    %c0_i32_1 = arith.constant 0 : i32
    return %c0_i32, %c0_i32_0 : i32, i32
  }
  func.func @transform_4(%arg0: i32) -> (i32, i32) {
    %c0_i32 = arith.constant 0 : i32
    %c0_i32_0 = arith.constant 0 : i32
    %c0_i32_1 = arith.constant 0 : i32
    return %c0_i32, %c0_i32_0 : i32, i32
  }
  func.func @transform_5(%arg0: i32) -> (i32, i32) {
    %c0_i32 = arith.constant 0 : i32
    %c0_i32_0 = arith.constant 0 : i32
    %c0_i32_1 = arith.constant 0 : i32
    return %c0_i32, %c0_i32_0 : i32, i32
  }
  func.func @transform_6(%arg0: i32) -> (i32, i32) {
    %c0_i32 = arith.constant 0 : i32
    %c0_i32_0 = arith.constant 0 : i32
    %c0_i32_1 = arith.constant 0 : i32
    return %c0_i32, %c0_i32_0 : i32, i32
  }
  func.func @transform_7(%arg0: i32) -> (i32, i32) {
    %c0_i32 = arith.constant 0 : i32
    %c0_i32_0 = arith.constant 0 : i32
    %c0_i32_1 = arith.constant 0 : i32
    return %c0_i32, %c0_i32_0 : i32, i32
  }
  func.func @transform_8(%arg0: i32) -> (i32, i32) {
    %c0_i32 = arith.constant 0 : i32
    %c0_i32_0 = arith.constant 0 : i32
    return %arg0, %c0_i32 : i32, i32
  }
}

</mosaic_0001>

<bundles_post_ra>
// kernel: tpu_custom_call.1
= control target key start
LH: loop header
LB: loop body
LE: loop exit
PB: predicated region body
PF: predicated region fallthrough
CT: control target
= control target key end

     0   :  { %v854_v7 = vmov 0.0   ;;  %vm62_vm0 = vcmask 523264   ;;  %s1233_s0 = inlined_call_operand.vmem [shape: f32[32,64], index: 0, kind: input, shape index: {}]   ;;  %s1234_s1 = inlined_call_operand.vmem [shape: f32[64,164], index: 1, kind: input, shape index: {}]   ;;  %s1235_s2 = inlined_call_operand.vmem [shape: f32[1,164], index: 2, kind: input, shape index: {}]   ;;  %s1236_s3 = inlined_call_operand.vmem [shape: f32[164,150], index: 3, kind: input, shape index: {}]   ;;  %s1237_s4 = inlined_call_operand.vmem [shape: f32[1,150], index: 4, kind: input, shape index: {}]   ;;  %s1238_s5 = inlined_call_operand.vmem [shape: f32[150,128], index: 5, kind: input, shape index: {}]   ;;  %s1239_s6 = inlined_call_operand.vmem [shape: f32[1,128], index: 6, kind: input, shape index: {}]   ;;  %s1240_s7 = inlined_call_operand.vmem [shape: f32[128,128], index: 7, kind: input, shape index: {}]   ;;  %s1241_s8 = inlined_call_operand.hbm [shape: f32[32,128], index: 8, kind: output, shape index: {}]  }
   0x1   :  { %v35_v0 = vld [vmem:[%s1234_s1 + $0x8] sm:$0xff]  ;;  %v37_v1 = vld [vmem:[%s1234_s1 + $0x18] sm:$0xff]  ;;  %v34_v2 = vld [vmem:[%s1234_s1] sm:$0xff]  ;;  %139 = vmatprep.mubr.f32.mxu0 %v854_v7 }
   0x2   :  { %v694_v3 = vpack.c.bf16 %v37_v1, %v35_v0  ;;  %v36_v4 = vld [vmem:[%s1234_s1 + $0x10] sm:$0xff]  ;;  %v39_v5 = vld [vmem:[%s1234_s1 + $0x28] sm:$0xff]  ;;  %v41_v6 = vld [vmem:[%s1234_s1 + $0x38] sm:$0xff] }
   0x3   :  { %v696_v8 = vpack.c.bf16 %v36_v4, %v34_v2  ;;  %v698_v9 = vpack.c.bf16 %v41_v6, %v39_v5  ;;  %v38_v10 = vld [vmem:[%s1234_s1 + $0x20] sm:$0xff]  ;;  %v40_v11 = vld [vmem:[%s1234_s1 + $0x30] sm:$0xff]  ;;  %v43_v12 = vld [vmem:[%s1234_s1 + $0x48] sm:$0xff] }
   0x4   :  { %695 = vmatprep.subr.bf16.mxu0 %v694_v3  ;;  %v45_v13 = vld [vmem:[%s1234_s1 + $0x58] sm:$0xff]  ;;  %v700_v14 = vpack.c.bf16 %v40_v11, %v38_v10  ;;  %v42_v16 = vld [vmem:[%s1234_s1 + $0x40] sm:$0xff]  ;;  %v44_v17 = vld [vmem:[%s1234_s1 + $0x50] sm:$0xff] }
   0x5   :  { %697 = vmatpush1.bf16.msra.mxu0 %v696_v8  ;;  %v702_v15 = vpack.c.bf16 %v45_v13, %v43_v12  ;;  %v47_v18 = vld [vmem:[%s1234_s1 + $0x68] sm:$0xff]  ;;  %v49_v19 = vld [vmem:[%s1234_s1 + $0x78] sm:$0xff]  ;;  %v46_v21 = vld [vmem:[%s1234_s1 + $0x60] sm:$0xff]  ;;  %v704_v26 = vpack.c.bf16 %v44_v17, %v42_v16 }
   0x6   :  { %699 = vmatprep.subr.bf16.mxu0 %v698_v9  ;;  %v173_v20 = vld [vmem:[%s1236_s3 + $0x8] sm:$0xff]  ;;  %v48_v22 = vld [vmem:[%s1234_s1 + $0x70] sm:$0xff]  ;;  %v175_v23 = vld [vmem:[%s1236_s3 + $0x18] sm:$0xff]  ;;  %v706_v32 = vpack.c.bf16 %v49_v19, %v47_v18 }
   0x7   :  { %v172_v24 = vld [vmem:[%s1236_s3] sm:$0xff]  ;;  %v174_v25 = vld [vmem:[%s1236_s3 + $0x10] sm:$0xff]  ;;  %v710_v27 = vpack.c.bf16 %v175_v23, %v173_v20  ;;  %v177_v29 = vld [vmem:[%s1236_s3 + $0x28] sm:$0xff]  ;;  %v708_v38 = vpack.c.bf16 %v48_v22, %v46_v21 }
   0x8   :  { %v712_v28 = vpack.c.bf16 %v174_v25, %v172_v24  ;;  %v179_v30 = vld [vmem:[%s1236_s3 + $0x38] sm:$0xff]  ;;  %v176_v31 = vld [vmem:[%s1236_s3 + $0x20] sm:$0xff]  ;;  %v178_v34 = vld [vmem:[%s1236_s3 + $0x30] sm:$0xff] }
   0x9   :  { %701 = vmatpush1.bf16.msra.mxu0 %v700_v14  ;;  %v714_v33 = vpack.c.bf16 %v179_v30, %v177_v29  ;;  %v181_v35 = vld [vmem:[%s1236_s3 + $0x48] sm:$0xff]  ;;  %v183_v36 = vld [vmem:[%s1236_s3 + $0x58] sm:$0xff]  ;;  %711 = vmatprep.subr.bf16.mxu1 %v710_v27  ;;  %v716_v37 = vpack.c.bf16 %v178_v34, %v176_v31  ;;  %v180_v40 = vld [vmem:[%s1236_s3 + $0x40] sm:$0xff] }
   0xa   :  { %703 = vmatprep.subr.bf16.mxu0 %v702_v15  ;;  %713 = vmatpush1.bf16.msra.mxu1 %v712_v28  ;;  %v718_v39 = vpack.c.bf16 %v183_v36, %v181_v35  ;;  %v182_v41 = vld [vmem:[%s1236_s3 + $0x50] sm:$0xff]  ;;  %v185_v42 = vld [vmem:[%s1236_s3 + $0x68] sm:$0xff]  ;;  %v187_v43 = vld [vmem:[%s1236_s3 + $0x78] sm:$0xff] }
   0xb   :  { %715 = vmatprep.subr.bf16.mxu1 %v714_v33  ;;  %v720_v44 = vpack.c.bf16 %v182_v41, %v180_v40  ;;  %v30_v45 = vld [vmem:[%s1233_s0] sm:$0xff]  ;;  %v722_v46 = vpack.c.bf16 %v187_v43, %v185_v42  ;;  %v186_v48 = vld [vmem:[%s1236_s3 + $0x70] sm:$0xff]  ;;  %v189_v49 = vld [vmem:[%s1236_s3 + $0x88] sm:$0xff] }
   0xc   :  { %v184_v47 = vld [vmem:[%s1236_s3 + $0x60] sm:$0xff]  ;;  %v191_v50 = vld [vmem:[%s1236_s3 + $0x98] sm:$0xff] }
   0xd   :  { %705 = vmatpush1.bf16.msra.mxu0 %v704_v26  ;;  %v724_v51 = vpack.c.bf16 %v186_v48, %v184_v47 }
   0xe   :  { %707 = vmatprep.subr.bf16.mxu0 %v706_v32  ;;  %717 = vmatpush1.bf16.msra.mxu1 %v716_v37 }
   0xf   :  { %719 = vmatprep.subr.bf16.mxu1 %v718_v39 }
  0x11   :  { %709 = vmatpush1.bf16.msra.mxu0 %v708_v38 }
  0x12   :  { %721 = vmatpush1.bf16.msra.mxu1 %v720_v44 }
  0x14   :  { %620 = vmatmul.mubr.msk.f32.vlgmr.msra.gmra.mrb[0].mxu0 %vm62_vm0, %v30_v45 }
  0x15   :  { %13 = vsyncpa [#allocation3], 0  ;;  %145 = vmatprep.mubr.f32.mxu0 %v854_v7  ;;  %v31_v52 = vld [vmem:[%s1233_s0 + $0x8] sm:$0xff]  ;;  %723 = vmatprep.subr.bf16.mxu1 %v722_v46  ;;  %v726_v53 = vpack.c.bf16 %v191_v50, %v189_v49  ;;  %v188_v54 = vld [vmem:[%s1236_s3 + $0x80] sm:$0xff]  ;;  %vm239_vm1 = vcmask 1043456   ;;  %v855_v31 = vmov 0.0|0.0  }
  0x16   :  { %v190_v55 = vld [vmem:[%s1236_s3 + $0x90] sm:$0xff]  ;;  %v193_v56 = vld [vmem:[%s1236_s3 + $0xa8] sm:$0xff]  ;;  %v195_v57 = vld [vmem:[%s1236_s3 + $0xb8] sm:$0xff]  ;;  %725 = vmatpush1.bf16.msra.mxu1 %v724_v51  ;;  %750 = vmatprep.subr.bf16.mxu0 %v855_v31  ;;  %vm226_vm2 = vcmask 293888   ;;  %vm382_vm3 = vcmask 1045504   ;;  %vm369_vm4 = vcmask 179200  }
  0x17   :  { %v728_v58 = vpack.c.bf16 %v190_v55, %v188_v54  ;;  %v32_v59 = vld [vmem:[%s1233_s0 + $0x10] sm:$0xff]  ;;  %727 = vmatprep.subr.bf16.mxu1 %v726_v53  ;;  %v730_v60 = vpack.c.bf16 %v195_v57, %v193_v56  ;;  %v192_v61 = vld [vmem:[%s1236_s3 + $0xa0] sm:$0xff]  ;;  %v197_v63 = vld [vmem:[%s1236_s3 + $0xc8] sm:$0xff]  ;;  %v52_v53 = vlaneseq }
  0x18   :  { %621 = vmatmul.mubr.msk.f32.gmra.mrb[2].mxu0 %vm62_vm0, %v31_v52  ;;  %v194_v62 = vld [vmem:[%s1236_s3 + $0xb0] sm:$0xff]  ;;  %v199_v0 = vld [vmem:[%s1236_s3 + $0xd8] sm:$0xff]  ;;  %v196_v4 = vld [vmem:[%s1236_s3 + $0xc0] sm:$0xff] }
  0x19   :  { %151 = vmatprep.mubr.f32.mxu0 %v854_v7  ;;  %v732_v1 = vpack.c.bf16 %v194_v62, %v192_v61  ;;  %v33_v2 = vld [vmem:[%s1233_s0 + $0x18] sm:$0xff]  ;;  %v734_v3 = vpack.c.bf16 %v199_v0, %v197_v63  ;;  %v198_v5 = vld [vmem:[%s1236_s3 + $0xd0] sm:$0xff]  ;;  %v201_v6 = vld [vmem:[%s1236_s3 + $0xe8] sm:$0xff]  ;;  %v53_v54 = vshrl.u32 %v52_v53, 7 }
  0x1a   :  { %729 = vmatpush1.bf16.msra.mxu1 %v728_v58  ;;  %v203_v8 = vld [vmem:[%s1236_s3 + $0xf8] sm:$0xff]  ;;  %v736_v9 = vpack.c.bf16 %v198_v5, %v196_v4  ;;  %v200_v11 = vld [vmem:[%s1236_s3 + $0xe0] sm:$0xff]  ;;  %v202_v12 = vld [vmem:[%s1236_s3 + $0xf0] sm:$0xff] }
  0x1b   :  { %731 = vmatprep.subr.bf16.mxu1 %v730_v60  ;;  %v738_v10 = vpack.c.bf16 %v203_v8, %v201_v6  ;;  %v205_v13 = vld [vmem:[%s1236_s3 + $0x108] sm:$0xff]  ;;  %v207_v14 = vld [vmem:[%s1236_s3 + $0x118] sm:$0xff]  ;;  %v740_v15 = vpack.c.bf16 %v202_v12, %v200_v11  ;;  %v204_v17 = vld [vmem:[%s1236_s3 + $0x100] sm:$0xff]  ;;  %v54_v55 = vsub.s32 0, %v53_v54  ;;  %v58_v57 = vsub.s32 1, %v53_v54 }
  0x1c   :  { %622 = vmatmul.mubr.msk.f32.gmra.mrb[4].mxu0 %vm62_vm0, %v32_v59  ;;  %v742_v16 = vpack.c.bf16 %v207_v14, %v205_v13  ;;  %v206_v18 = vld [vmem:[%s1236_s3 + $0x110] sm:$0xff]  ;;  %v209_v20 = vld [vmem:[%s1236_s3 + $0x128] sm:$0xff]  ;;  %v211_v21 = vld [vmem:[%s1236_s3 + $0x138] sm:$0xff] }
  0x1d   :  { %157 = vmatprep.mubr.f32.mxu0 %v854_v7  ;;  %v744_v19 = vpack.c.bf16 %v206_v18, %v204_v17  ;;  %v746_v22 = vpack.c.bf16 %v211_v21, %v209_v20  ;;  %v208_v23 = vld [vmem:[%s1236_s3 + $0x120] sm:$0xff]  ;;  %v210_v24 = vld [vmem:[%s1236_s3 + $0x130] sm:$0xff]  ;;  %v213_v26 = vld [vmem:[%s1236_s3 + $0x148] sm:$0xf] }
  0x1e   :  { %733 = vmatpush1.bf16.msra.mxu1 %v732_v1  ;;  %v748_v25 = vpack.c.bf16 %v210_v24, %v208_v23  ;;  %v212_v27 = vld [vmem:[%s1236_s3 + $0x140] sm:$0xf]  ;;  %v344_v29 = vld [vmem:[%s1238_s5 + $0x8] sm:$0xff]  ;;  %v345_v30 = vld [vmem:[%s1238_s5 + $0x10] sm:$0xff] }
  0x1f   :  { %735 = vmatprep.subr.bf16.mxu1 %v734_v3  ;;  %v343_v28 = vld [vmem:[%s1238_s5] sm:$0xff]  ;;  %v346_v33 = vld [vmem:[%s1238_s5 + $0x18] sm:$0xff]  ;;  %v348_v36 = vld [vmem:[%s1238_s5 + $0x28] sm:$0xff] }
  0x20   :  { %623 = vmatmul.mubr.msk.f32.gmra.mrb[6].mxu0 %vm62_vm0, %v33_v2  ;;  %v751_v32 = vpack.c.bf16 %v344_v29, %v343_v28  ;;  %v754_v34 = vpack.c.bf16 %v346_v33, %v345_v30  ;;  %v347_v35 = vld [vmem:[%s1238_s5 + $0x20] sm:$0xff]  ;;  %v349_v38 = vld [vmem:[%s1238_s5 + $0x30] sm:$0xff]  ;;  %v350_v39 = vld [vmem:[%s1238_s5 + $0x38] sm:$0xff] }
  0x21   :  { %v757_v37 = vpack.c.bf16 %v348_v36, %v347_v35  ;;  %v760_v40 = vpack.c.bf16 %v350_v39, %v349_v38  ;;  %v351_v41 = vld [vmem:[%s1238_s5 + $0x40] sm:$0xff]  ;;  %v352_v42 = vld [vmem:[%s1238_s5 + $0x48] sm:$0xff]  ;;  %v353_v44 = vld [vmem:[%s1238_s5 + $0x50] sm:$0xff] }
  0x22   :  { %737 = vmatpush1.bf16.msra.mxu1 %v736_v9  ;;  %752 = vmatpush1.bf16.msra.mxu0 %v751_v32  ;;  %v763_v43 = vpack.c.bf16 %v352_v42, %v351_v41  ;;  %v354_v45 = vld [vmem:[%s1238_s5 + $0x58] sm:$0xff]  ;;  %v355_v47 = vld [vmem:[%s1238_s5 + $0x60] sm:$0xff]  ;;  %v356_v48 = vld [vmem:[%s1238_s5 + $0x68] sm:$0xff] }
  0x23   :  { %739 = vmatprep.subr.bf16.mxu1 %v738_v10  ;;  %753 = vmatprep.subr.bf16.mxu0 %v855_v31  ;;  %v766_v46 = vpack.c.bf16 %v354_v45, %v353_v44  ;;  %v769_v49 = vpack.c.bf16 %v356_v48, %v355_v47  ;;  %v357_v50 = vld [vmem:[%s1238_s5 + $0x70] sm:$0xff]  ;;  %v358_v51 = vld [vmem:[%s1238_s5 + $0x78] sm:$0xff]  ;;  %v50_v56 = vld [vmem:[%s1235_s2] sm:$0x3] }
  0x24   :  { %v772_v52 = vpack.c.bf16 %v358_v51, %v357_v50  ;;  %v55_v58 = vrot.slane %v50_v56, %v54_v55  ;;  %v59_v59 = vrot.slane %v50_v56, %v58_v57  ;;  %v359_v21 = vld [vmem:[%s1238_s5 + $0x80] sm:$0xff]  ;;  %v361_v24 = vld [vmem:[%s1238_s5 + $0x90] sm:$0x3f] }
  0x25   :  { %v491_v51 = vld [vmem:[%s1240_s7] sm:$0xff]  ;;  %v493_v53 = vld [vmem:[%s1240_s7 + $0x10] sm:$0xff] }
  0x26   :  { %741 = vmatpush1.bf16.msra.mxu1 %v740_v15  ;;  %755 = vmatpush1.bf16.msra.mxu0 %v754_v34 }
  0x27   :  { %743 = vmatprep.subr.bf16.mxu1 %v742_v16  ;;  %756 = vmatprep.subr.bf16.mxu0 %v855_v31 }
  0x2a   :  { %745 = vmatpush1.bf16.msra.mxu1 %v744_v19  ;;  %758 = vmatpush1.bf16.msra.mxu0 %v757_v37 }
  0x2b   :  { %747 = vmatprep.subr.bf16.mxu1 %v746_v22  ;;  %759 = vmatprep.subr.bf16.mxu0 %v855_v31  ;;  %v360_v22 = vld [vmem:[%s1238_s5 + $0x88] sm:$0xff] }
  0x2c   :  { %v775_v23 = vpack.c.bf16 %v360_v22, %v359_v21  ;;  %v505_v22 = vld [vmem:[%s1240_s7 + $0x70] sm:$0xff] }
  0x2e   :  { %749 = vmatpush1.bf16.msra.mxu1 %v748_v25  ;;  %761 = vmatpush1.bf16.msra.mxu0 %v760_v40  ;;  %v214_v25 = vld [vmem:[%s1237_s4] sm:$0x3] }
  0x2f   :  { %624 = vmatprep.subr.msk.mxu1 %vm239_vm1, %v213_v26  ;;  %762 = vmatprep.subr.bf16.mxu0 %v855_v31  ;;  %v219_v26 = vrot.slane %v214_v25, %v54_v55  ;;  %v494_v55 = vld [vmem:[%s1240_s7 + $0x18] sm:$0xff] }
  0x30   :  { %v781_v56 = vpack.c.bf16 %v494_v55, %v493_v53 }
  0x32   :  { %625 = vmatpush1.msk.msra.mxu1 %vm239_vm1, %v212_v27  ;;  %764 = vmatpush1.bf16.msra.mxu0 %v763_v43  ;;  %v223_v27 = vrot.slane %v214_v25, %v58_v57  ;;  %v495_v57 = vld [vmem:[%s1240_s7 + $0x20] sm:$0xff] }
  0x33   :  { %765 = vmatprep.subr.bf16.mxu0 %v855_v31 }
  0x36   :  { %767 = vmatpush1.bf16.msra.mxu0 %v766_v46 }
  0x37   :  { %768 = vmatprep.subr.bf16.mxu0 %v855_v31 }
  0x3a   :  { %770 = vmatpush1.bf16.msra.mxu0 %v769_v49 }
  0x3b   :  { %771 = vmatprep.subr.bf16.mxu0 %v855_v31 }
  0x3e   :  { %773 = vmatpush1.bf16.msra.mxu0 %v772_v52  ;;  %v492_v52 = vld [vmem:[%s1240_s7 + $0x8] sm:$0xff] }
  0x3f   :  { %774 = vmatprep.subr.bf16.mxu0 %v855_v31  ;;  %v777_v54 = vpack.c.bf16 %v492_v52, %v491_v51 }
  0x41   :  { %778 = vmatprep.subr.bf16.mxu1 %v777_v54 }
  0x42   :  { %776 = vmatpush1.bf16.msra.mxu0 %v775_v23  ;;  %v506_v23 = vld [vmem:[%s1240_s7 + $0x78] sm:$0xff] }
  0x43   :  { %422 = vmatprep.subr.mxu0 %v854_v7 }
  0x46   :  { %631 = vmatpush1.msk.msra.mxu0 %vm382_vm3, %v361_v24  ;;  %v805_v24 = vpack.c.bf16 %v506_v23, %v505_v22 }
  0xe7   :  { %v141_v60 = vpop.f32.mrb[0].mxu0 }
  0xe8   :  { %v142_v61 = vadd.f32 %v141_v60, %v55_v58  ;;  %v143_v62 = vpop.f32.mrb[1].mxu0  ;;  %v497_v60 = vld [vmem:[%s1240_s7 + $0x30] sm:$0xff] }
  0xe9   :  { %v144_v63 = vadd.f32 %v143_v62, %v59_v59 }
  0xea   :  { %v164_v2 = vmax.f32 %v142_v61, 0.0  ;;  %v498_v61 = vld [vmem:[%s1240_s7 + $0x38] sm:$0xff] }
  0xeb   :  { %v165_v0 = vmax.f32 %v144_v63, 0.0  ;;  %v147_v1 = vpop.f32.mrb[2].mxu0  ;;  %v789_v62 = vpack.c.bf16 %v498_v61, %v497_v60  ;;  %v630_v63 = vld [vmem:[%s1239_s6] ss:$0 sm:$0xff] }
  0xec   :  { %v148_v3 = vadd.f32 %v147_v1, %v55_v58  ;;  %v149_v4 = vpop.f32.mrb[3].mxu0 }
  0xed   :  { %v150_v5 = vadd.f32 %v149_v4, %v59_v59  ;;  %626 = vmatprep.mubr.msk.f32.mxu1 %vm226_vm2, %v165_v0 }
  0xee   :  { %311 = vmatmul.mubr.f32.vlgmr.msra.gmra.mrb[0].mxu1 %v164_v2  ;;  %v166_v9 = vmax.f32 %v148_v3, 0.0 }
  0xef   :  { %v167_v6 = vmax.f32 %v150_v5, 0.0  ;;  %v153_v8 = vpop.f32.mrb[4].mxu0  ;;  %780 = vmatpush3.bf16.msra.mxu1 %v777_v54 }
  0xf0   :  { %v154_v10 = vadd.f32 %v153_v8, %v55_v58  ;;  %v155_v11 = vpop.f32.mrb[5].mxu0  ;;  %782 = vmatprep.subr.bf16.mxu1 %v781_v56 }
  0xf1   :  { %v156_v12 = vadd.f32 %v155_v11, %v59_v59  ;;  %627 = vmatprep.mubr.msk.f32.mxu1 %vm226_vm2, %v167_v6 }
  0xf2   :  { %317 = vmatmul.mubr.f32.gmra.mrb[2].mxu1 %v166_v9  ;;  %v168_v15 = vmax.f32 %v154_v10, 0.0 }
  0xf3   :  { %v169_v13 = vmax.f32 %v156_v12, 0.0  ;;  %v159_v14 = vpop.f32.mrb[6].mxu0  ;;  %784 = vmatpush3.bf16.msra.mxu1 %v781_v56 }
  0xf4   :  { %v160_v16 = vadd.f32 %v159_v14, %v55_v58  ;;  %v161_v17 = vpop.f32.mrb[7].mxu0  ;;  %v496_v58 = vld [vmem:[%s1240_s7 + $0x28] sm:$0xff] }
  0xf5   :  { %v162_v18 = vadd.f32 %v161_v17, %v59_v59  ;;  %628 = vmatprep.mubr.msk.f32.mxu1 %vm226_vm2, %v169_v13  ;;  %v785_v59 = vpack.c.bf16 %v496_v58, %v495_v57  ;;  %v499_v13 = vld [vmem:[%s1240_s7 + $0x40] sm:$0xff]  ;;  %v500_v14 = vld [vmem:[%s1240_s7 + $0x48] sm:$0xff]  ;;  %v502_v17 = vld [vmem:[%s1240_s7 + $0x58] sm:$0xff] }
  0xf6   :  { %323 = vmatmul.mubr.f32.gmra.mrb[4].mxu1 %v168_v15  ;;  %v170_v20 = vmax.f32 %v160_v16, 0.0  ;;  %v793_v15 = vpack.c.bf16 %v500_v14, %v499_v13  ;;  %v501_v16 = vld [vmem:[%s1240_s7 + $0x50] sm:$0xff] }
  0xf7   :  { %v171_v19 = vmax.f32 %v162_v18, 0.0  ;;  %786 = vmatprep.subr.bf16.mxu1 %v785_v59  ;;  %v797_v18 = vpack.c.bf16 %v502_v17, %v501_v16 }
  0xf8   :  { %788 = vmatpush3.bf16.msra.mxu1 %v785_v59 }
  0xf9   :  { %629 = vmatprep.mubr.msk.f32.mxu1 %vm226_vm2, %v171_v19  ;;  %790 = vmatprep.subr.bf16.mxu1 %v789_v62  ;;  %v503_v19 = vld [vmem:[%s1240_s7 + $0x60] sm:$0xff] }
  0xfa   :  { %329 = vmatmul.mubr.f32.gmra.mrb[6].mxu1 %v170_v20  ;;  %v504_v20 = vld [vmem:[%s1240_s7 + $0x68] sm:$0xff]  ;;  %s856_s7 = smov [#allocation2]  }
  0xfb   :  { %v801_v21 = vpack.c.bf16 %v504_v20, %v503_v19  ;;  %s609_s30 = sshll.u32 %s856_s7, 4  ;;  %s610_s30 = int_to_ptr.vmem [resolvable:$true] %s609_s30 }
  0xfc   :  { %792 = vmatpush3.bf16.msra.mxu1 %v789_v62  ;;  %s830_s9 = scalar_lea.vmem %s610_s30, 512  ;;  %p835_p1 = scmp.lt.s32.totalorder %s610_s30, %s610_s30 }
  0xfd   :  { %794 = vmatprep.subr.bf16.mxu1 %v793_v15  ;;  %p831_p0 = scmp.ne.s32.totalorder %s610_s30, %s830_s9  ;;  %p836_p2 = scmp.lt.s32.totalorder %s830_s9, %s830_s9 }
  0xff   :  { %p837_p3 = por %p836_p2, %p835_p1 }
 0x100   :  { %796 = vmatpush3.bf16.msra.mxu1 %v793_v15 }
 0x101   :  { %798 = vmatprep.subr.bf16.mxu1 %v797_v18  ;;  %p838_p4 = pnand %p837_p3, %p831_p0 }
 0x104   :  { %800 = vmatpush3.bf16.msra.mxu1 %v797_v18 }
 0x105   :  { %802 = vmatprep.subr.bf16.mxu1 %v801_v21 }
 0x108   :  { %804 = vmatpush3.bf16.msra.mxu1 %v801_v21 }
 0x109   :  { %806 = vmatprep.subr.bf16.mxu1 %v805_v24 }
 0x10c   :  { %808 = vmatpush3.bf16.msra.mxu1 %v805_v24 }
 0x1c1   :  { %v312_v28 = vpop.f32.mrb[0].mxu1 }
 0x1c2   :  { %v313_v29 = vadd.f32 %v312_v28, %v219_v26  ;;  %v314_v30 = vpop.f32.mrb[1].mxu1 }
 0x1c3   :  { %v315_v31 = vadd.f32 %v314_v30, %v223_v27 }
 0x1c4   :  { %v335_v7 = vmax.f32 %v313_v29, 0.0 }
 0x1c5   :  { %v336_v32 = vmax.f32 %v315_v31, 0.0  ;;  %v318_v33 = vpop.f32.mrb[2].mxu1 }
 0x1c6   :  { %v319_v34 = vadd.f32 %v318_v33, %v219_v26  ;;  %v320_v35 = vpop.f32.mrb[3].mxu1 }
 0x1c7   :  { %v321_v36 = vadd.f32 %v320_v35, %v223_v27  ;;  %632 = vmatprep.mubr.msk.f32.mxu0 %vm369_vm4, %v336_v32 }
 0x1c8   :  { %451 = vmatmul.mubr.f32.vlgmr.msra.gmra.mrb[8].mxu0 %v335_v7  ;;  %v337_v39 = vmax.f32 %v319_v34, 0.0 }
 0x1c9   :  { %v338_v37 = vmax.f32 %v321_v36, 0.0  ;;  %v324_v38 = vpop.f32.mrb[4].mxu1 }
 0x1ca   :  { %v325_v40 = vadd.f32 %v324_v38, %v219_v26  ;;  %v326_v41 = vpop.f32.mrb[5].mxu1 }
 0x1cb   :  { %v327_v42 = vadd.f32 %v326_v41, %v223_v27  ;;  %633 = vmatprep.mubr.msk.f32.mxu0 %vm369_vm4, %v338_v37 }
 0x1cc   :  { %456 = vmatmul.mubr.f32.gmra.mrb[10].mxu0 %v337_v39  ;;  %v339_v45 = vmax.f32 %v325_v40, 0.0 }
 0x1cd   :  { %v340_v43 = vmax.f32 %v327_v42, 0.0  ;;  %v330_v44 = vpop.f32.mrb[6].mxu1 }
 0x1ce   :  { %v331_v46 = vadd.f32 %v330_v44, %v219_v26  ;;  %v332_v47 = vpop.f32.mrb[7].mxu1 }
 0x1cf   :  { %v333_v48 = vadd.f32 %v332_v47, %v223_v27  ;;  %634 = vmatprep.mubr.msk.f32.mxu0 %vm369_vm4, %v340_v43 }
 0x1d0   :  { %461 = vmatmul.mubr.f32.gmra.mrb[12].mxu0 %v339_v45  ;;  %v341_v50 = vmax.f32 %v331_v46, 0.0 }
 0x1d1   :  { %v342_v49 = vmax.f32 %v333_v48, 0.0 }
 0x1d3   :  { %635 = vmatprep.mubr.msk.f32.mxu0 %vm369_vm4, %v342_v49 }
 0x1d4   :  { %466 = vmatmul.mubr.f32.gmra.mrb[14].mxu0 %v341_v50 }
 0x29b   :  { %v452_v0 = vpop.f32.mrb[8].mxu0 }
 0x29c   :  { %v453_v1 = vadd.f32 %v630_v63, %v452_v0  ;;  %v454_v2 = vpop.f32.mrb[9].mxu0 }
 0x29e   :  { %471 = vmax.xlane.f32.xlu0 %v453_v1 }
 0x29f   :  { %v457_v3 = vpop.f32.mrb[10].mxu0 }
 0x2a0   :  { %v458_v4 = vadd.f32 %v630_v63, %v457_v3  ;;  %v459_v5 = vpop.f32.mrb[11].mxu0 }
 0x2a2   :  { %473 = vmax.xlane.f32.xlu0 %v458_v4 }
 0x2a3   :  { %v462_v6 = vpop.f32.mrb[12].mxu0 }
 0x2a4   :  { %v463_v8 = vadd.f32 %v630_v63, %v462_v6  ;;  %v464_v9 = vpop.f32.mrb[13].mxu0 }
 0x2a6   :  { %475 = vmax.xlane.f32.xlu1 %v463_v8 }
 0x2a7   :  { %v467_v10 = vpop.f32.mrb[14].mxu0 }
 0x2a8   :  { %v468_v11 = vadd.f32 %v630_v63, %v467_v10  ;;  %v469_v12 = vpop.f32.mrb[15].mxu0 }
 0x2aa   :  { %477 = vmax.xlane.f32.xlu1 %v468_v11 }
 0x32b   :  { %v472_v25 = vpop.xlane.xlu0 %471 }
 0x32c   :  { %v479_v26 = vsub.f32 %v453_v1, %v472_v25 }
 0x32e   :  { %v483_v27 = vmul.f32 1.442695, %v479_v26 }
 0x32f   :  { %v474_v28 = vpop.xlane.xlu0 %473 }
 0x330   :  { %814 = vpow2.f32 %v483_v27  ;;  %v480_v29 = vsub.f32 %v458_v4, %v474_v28 }
 0x332   :  { %v485_v30 = vmul.f32 1.442695, %v480_v29 }
 0x333   :  { %v476_v31 = vpop.xlane.xlu1 %475 }
 0x334   :  { %816 = vpow2.f32 %v485_v30  ;;  %v481_v32 = vsub.f32 %v463_v8, %v476_v31 }
 0x336   :  { %v487_v33 = vmul.f32 1.442695, %v481_v32 }
 0x337   :  { %v478_v7 = vpop.xlane.xlu1 %477 }
 0x338   :  { %818 = vpow2.f32 %v487_v33  ;;  %v482_v34 = vsub.f32 %v468_v11, %v478_v7 }
 0x33a   :  { %v815_v35 = vpop.eup %814  ;;  %v489_v36 = vmul.f32 1.442695, %v482_v34 }
 0x33b   :  { %688 = vmatprep.mubr.f32.mxu1 %v815_v35 }
 0x33c   :  { %820 = vpow2.f32 %v489_v36 }
 0x33e   :  { %v817_v37 = vpop.eup %816 }
 0x33f   :  { %689 = vmatmul.mubr.f32.vlgmr.msra.gmra.mrb[8].mxu1 %v817_v37 }
 0x342   :  { %v819_v38 = vpop.eup %818 }
 0x343   :  { %691 = vmatprep.mubr.f32.mxu1 %v819_v38 }
 0x346   :  { %v821_v39 = vpop.eup %820 }
 0x347   :  { %692 = vmatmul.mubr.f32.gmra.mrb[10].mxu1 %v821_v39 }
 0x412   :  { %v690_v40 = vpop.f32.mrb[8].mxu1 }
 0x413   :  { %822 = vrcp.f32 %v690_v40  ;;  %v573_v41 = vpop.f32.mrb[9].mxu1 }
 0x414   :  { %824 = vrcp.f32 %v573_v41 }
 0x41a   :  { %v693_v42 = vpop.f32.mrb[10].mxu1 }
 0x41b   :  { %826 = vrcp.f32 %v693_v42  ;;  %v583_v43 = vpop.f32.mrb[11].mxu1 }
 0x41c   :  { %828 = vrcp.f32 %v583_v43 }
 0x41d   :  { %v823_v44 = vpop.eup %822 }
 0x41e   :  { %v825_v45 = vpop.eup %824  ;;  %v597_v46 = vmul.f32 %v823_v44, %v817_v37 }
 0x41f   :  { %v596_v47 = vmul.f32 %v825_v45, %v815_v35 }
 0x420   :  { %601 = vst [vmem:[#allocation2 + $0x8] sm:$0xff] %v597_v46 }
 0x421   :  { %600 = vst [vmem:[#allocation2] sm:$0xff] %v596_v47 }
 0x425   :  { %v827_v48 = vpop.eup %826 }
 0x426   :  { %v829_v49 = vpop.eup %828  ;;  %v599_v50 = vmul.f32 %v827_v48, %v821_v39 }
 0x427   :  { %v598_v51 = vmul.f32 %v829_v49, %v819_v38 }
 0x428   :  { %603 = vst [vmem:[#allocation2 + $0x18] sm:$0xff] %v599_v50 }
 0x429   :  { %602 = vst [vmem:[#allocation2 + $0x10] sm:$0xff] %v598_v51 }
 0x42a   :  { %841 = shalt.err (!%p838_p4)
}
 0x42b   :  { %s842_s12 = scalar_lea.hbm %s1241_s8, 512 }
 0x42c   :  { %p843_p5 = scmp.ne.s32.totalorder %s1241_s8, %s842_s12  ;;  %p846_p6 = scmp.lt.u32.totalorder %s842_s12, %s1241_s8 }
 0x42e   :  { %p848_p7 = pnand %p846_p6, %p843_p5 }
 0x430   :  { %851 = shalt.err (!%p848_p7)
}
 0x431   :  { %s857_s16 = smov 128   ;;  %s858_s17 = smov 8  }
 0x432   :  { %615 = dma.vmem_to_hbm [thread:$0]  %s610_s30, 512, %s1241_s8, [#allocation3], %s857_s16, %s857_s16, %s858_s17  }
 0x433   :  { %852 = dma.done.wait [#allocation3], 512  }
 0x434   :  { %853 = vsyncadd [#allocation3], 4294966784 }
 0x435   :  { %619 = vsyncpa [#allocation3], 1 }

</bundles_post_ra>
